<compile_context>
chip_gen: v7x
topology: tpu7x:2x2x1
jax: 0.10.0
libtpu: 0.0.40
codegen_flags: <defaults>
</compile_context>

<pallas_src>
import functools

import jax
import jax.numpy as jnp
from jax.experimental import pallas as pl
from jax.experimental.pallas import tpu as pltpu


def attention_pool_kernel(x_ref, pos_sp_ref, pos_cls_ref, wqkv_ref, bqkv_ref,
                          pool_ref, expand_ref, wc_ref, bc_ref, o_ref, *,
                          num_heads):
    """Processes a block of B batch elements per grid step.

    x_ref     : (B, C, HW)   NCHW slab (spatial flattened), any float dtype
    pos_sp_ref: (HW, C)      positional embedding, spatial rows (f32)
    pos_cls_ref: (1, C)      positional embedding, cls row (f32)
    wqkv_ref  : (C, 3C)      fused [Wq|Wk|Wv]^T, bf16
    bqkv_ref  : (1, 3C)      fused bias, f32
    pool_ref  : (C, H)       0/1 head-pooling matrix, f32
    expand_ref: (H, C)       its transpose, f32
    wc_ref    : (C, Dp)      output projection^T, zero-padded to Dp lanes, bf16
    bc_ref    : (1, Dp)      output bias, zero-padded, f32
    o_ref     : (B, 1, Dp)   pooled outputs
    """
    B, C, HW = x_ref.shape
    n_tok = HW + 1                               # spatial tokens + cls token
    Lp = ((n_tok + 7) // 8) * 8                  # sublane-aligned token count
    pad_rows = Lp - n_tok
    head_dim = C // num_heads
    scale = 1.0 / float(head_dim) ** 0.5

    # NCHW -> token-major, channel-last, in-kernel (saves a wrapper HBM pass).
    xs = jnp.transpose(x_ref[...].astype(jnp.float32), (0, 2, 1))   # (B, HW, C)

    spatial = xs + pos_sp_ref[...][None]                            # (B, HW, C)
    mean_tok = jnp.mean(xs, axis=1, keepdims=True)                  # (B, 1, C)
    cls_tok = mean_tok + pos_cls_ref[...][None]                     # (B, 1, C)

    # cls token at row HW (aligned boundary), zero padding rows after it.
    pieces = [spatial, cls_tok]
    if pad_rows:
        pieces.append(jnp.zeros((B, pad_rows, C), jnp.float32))
    tokens = jnp.concatenate(pieces, axis=1)                        # (B, Lp, C)

    # Fused QKV projection: one bf16 MXU matmul with M = B * Lp rows.
    tok2d = tokens.reshape(B * Lp, C).astype(jnp.bfloat16)
    qkv = jnp.dot(tok2d, wqkv_ref[...],
                  preferred_element_type=jnp.float32) + bqkv_ref[...]
    qkv = qkv.reshape(B, Lp, 3 * C)

    q = qkv[:, HW:HW + 1, 0 * C:1 * C] * scale                      # (B, 1, C)
    k = qkv[:, :, 1 * C:2 * C]                                      # (B, Lp, C)
    v = qkv[:, :, 2 * C:3 * C]                                      # (B, Lp, C)

    # Head-batched scores without head_dim lane sub-slices:
    #   s[b, l, h] = sum_c q[b, c] * k[b, l, c] * pool[c, h]
    sk = (k * q).reshape(B * Lp, C)
    s = jnp.dot(sk, pool_ref[...],
                preferred_element_type=jnp.float32).reshape(B, Lp, num_heads)

    if pad_rows:
        tok_idx = jax.lax.broadcasted_iota(jnp.int32, (B, Lp, num_heads), 1)
        s = jnp.where(tok_idx < n_tok, s, -1e30)

    # Single softmax over the token axis (f32), reciprocal on the EUP.
    s = s - jnp.max(s, axis=1, keepdims=True)
    p = jnp.exp(s)
    p = p * pl.reciprocal(jnp.sum(p, axis=1, keepdims=True), approx=True)

    # Expand per-head weights back to channels and reduce over tokens.
    p_full = jnp.dot(p.reshape(B * Lp, num_heads), expand_ref[...],
                     preferred_element_type=jnp.float32).reshape(B, Lp, C)
    attn = jnp.sum(p_full * v, axis=1)                              # (B, C)

    out = jnp.dot(attn.astype(jnp.bfloat16), wc_ref[...],
                  preferred_element_type=jnp.float32) + bc_ref[...]  # (B, Dp)
    o_ref[:, 0, :] = out.astype(o_ref.dtype)


def _pick_batch_block(n, max_block=64):
    """Largest divisor of n <= max_block while keeping >= 2 grid steps
    (so both v7x TensorCores get work) whenever n >= 2."""
    if n <= 1:
        return 1
    cap = max(1, min(max_block, n // 2))
    for b in range(cap, 0, -1):
        if n % b == 0:
            return b
    return 1


def attention_pool2d(x, params, num_heads, block_b=None):
    """x: (N, C, H, W) NCHW, same as the PyTorch module. Returns (N, Dout)."""
    N, C, H, W = x.shape
    HW = H * W
    assert C % num_heads == 0
    out_dim = params["wc"].shape[0]
    Dp = ((out_dim + 127) // 128) * 128          # lane-dense output width

    if block_b is None:
        block_b = _pick_batch_block(N)
    assert N % block_b == 0

    x_flat = x.reshape(N, C, HW)                 # free reshape, no HBM transpose

    pos = params["pos"].astype(jnp.float32)
    pos_cls = pos[0:1]                           # (1, C)
    pos_sp = pos[1:]                             # (HW, C)

    # Fused QKV weight/bias (bf16 weights for the MXU, f32 biases).
    wqkv = jnp.concatenate(
        [params["wq"].T, params["wk"].T, params["wv"].T], axis=1
    ).astype(jnp.bfloat16)                                           # (C, 3C)
    bqkv = jnp.concatenate(
        [params["bq"], params["bk"], params["bv"]]
    ).reshape(1, 3 * C).astype(jnp.float32)                          # (1, 3C)

    # Output projection, zero-padded to a multiple of 128 lanes.
    wc = jnp.zeros((C, Dp), jnp.bfloat16)
    wc = wc.at[:, :out_dim].set(params["wc"].T.astype(jnp.bfloat16))
    bc = jnp.zeros((1, Dp), jnp.float32)
    bc = bc.at[:, :out_dim].set(params["bc"].reshape(1, out_dim).astype(jnp.float32))

    # 0/1 head-pooling matrix (C, H) and its transpose (H, C).
    head_dim = C // num_heads
    head_id = jnp.arange(C, dtype=jnp.int32) // head_dim
    pool = (head_id[:, None] == jnp.arange(num_heads, dtype=jnp.int32)[None, :]
            ).astype(jnp.float32)                                    # (C, H)
    expand = pool.T                                                  # (H, C)

    kernel = functools.partial(attention_pool_kernel, num_heads=num_heads)

    out = pl.pallas_call(
        kernel,
        out_shape=jax.ShapeDtypeStruct((N, 1, Dp), jnp.float32),
        grid_spec=pltpu.PrefetchScalarGridSpec(
            num_scalar_prefetch=0,
            grid=(N // block_b,),
            in_specs=[
                pl.BlockSpec((block_b, C, HW), lambda i: (i, 0, 0)),   # x (NCHW)
                pl.BlockSpec((HW, C), lambda i: (0, 0)),               # pos spatial
                pl.BlockSpec((1, C), lambda i: (0, 0)),                # pos cls
                pl.BlockSpec((C, 3 * C), lambda i: (0, 0)),            # Wqkv^T
                pl.BlockSpec((1, 3 * C), lambda i: (0, 0)),            # bqkv
                pl.BlockSpec((C, num_heads), lambda i: (0, 0)),        # head pool
                pl.BlockSpec((num_heads, C), lambda i: (0, 0)),        # head expand
                pl.BlockSpec((C, Dp), lambda i: (0, 0)),               # Wc^T (padded)
                pl.BlockSpec((1, Dp), lambda i: (0, 0)),               # bc (padded)
            ],
            out_specs=pl.BlockSpec((block_b, 1, Dp), lambda i: (i, 0, 0)),
        ),
        compiler_params=pltpu.CompilerParams(
            dimension_semantics=("parallel",),
            vmem_limit_bytes=32 * 1024 * 1024),
    )(x_flat, pos_sp, pos_cls, wqkv, bqkv, pool, expand, wc, bc)

    return out[:, 0, :out_dim]                                       # (N, Dout)


def reference_attention_pool2d(x, params, num_heads):
    """Pure-JAX f32 reference mirroring F.multi_head_attention_forward."""
    N, C, H, W = x.shape
    HW = H * W
    x_tok = jnp.transpose(x.reshape(N, C, HW), (0, 2, 1))            # (N, HW, C)
    mean = jnp.mean(x_tok, axis=1, keepdims=True)                    # (N, 1, C)
    tokens = jnp.concatenate([mean, x_tok], axis=1) + params["pos"][None]

    head_dim = C // num_heads
    scale = 1.0 / (head_dim ** 0.5)

    q = (tokens[:, :1] @ params["wq"].T + params["bq"]) * scale      # (N, 1, C)
    k = tokens @ params["wk"].T + params["bk"]                       # (N, L, C)
    v = tokens @ params["wv"].T + params["bv"]                       # (N, L, C)

    L = tokens.shape[1]
    qh = q.reshape(N, 1, num_heads, head_dim).transpose(0, 2, 1, 3)
    kh = k.reshape(N, L, num_heads, head_dim).transpose(0, 2, 1, 3)
    vh = v.reshape(N, L, num_heads, head_dim).transpose(0, 2, 1, 3)
    s = jnp.einsum("bhqd,bhkd->bhqk", qh, kh)
    p = jax.nn.softmax(s, axis=-1)
    o = jnp.einsum("bhqk,bhkd->bhqd", p, vh)
    o = o.transpose(0, 2, 1, 3).reshape(N, 1, C)
    out = o @ params["wc"].T + params["bc"]
    return out[:, 0, :]


def init_params(key, spacial_dim, embed_dim, output_dim):
    L = spacial_dim ** 2 + 1
    ks = jax.random.split(key, 9)
    p = {}
    p["pos"] = jax.random.normal(ks[0], (L, embed_dim), jnp.float32) / (embed_dim ** 0.5)
    bound = 1.0 / (embed_dim ** 0.5)
    p["wq"] = jax.random.uniform(ks[1], (embed_dim, embed_dim), jnp.float32, -bound, bound)
    p["bq"] = jax.random.uniform(ks[2], (embed_dim,), jnp.float32, -bound, bound)
    p["wk"] = jax.random.uniform(ks[3], (embed_dim, embed_dim), jnp.float32, -bound, bound)
    p["bk"] = jax.random.uniform(ks[4], (embed_dim,), jnp.float32, -bound, bound)
    p["wv"] = jax.random.uniform(ks[5], (embed_dim, embed_dim), jnp.float32, -bound, bound)
    p["bv"] = jax.random.uniform(ks[6], (embed_dim,), jnp.float32, -bound, bound)
    p["wc"] = jax.random.uniform(ks[7], (output_dim, embed_dim), jnp.float32, -bound, bound)
    p["bc"] = jax.random.uniform(ks[8], (output_dim,), jnp.float32, -bound, bound)
    return p


if __name__ == "__main__":
    # spacial_dim=8 -> 64 spatial + 1 cls token, embed_dim=32, heads=4,
    # output_dim=64, batch=2 (grid of 2 steps, one element per step).
    N, embed_dim, spacial_dim, num_heads, output_dim = 2, 32, 8, 4, 64

    key = jax.random.PRNGKey(0)
    pkey, xkey = jax.random.split(key)
    params = init_params(pkey, spacial_dim, embed_dim, output_dim)
    x = jax.random.normal(xkey, (N, embed_dim, spacial_dim, spacial_dim), jnp.float32)

    fn = jax.jit(functools.partial(attention_pool2d, num_heads=num_heads))
    out = jax.block_until_ready(fn(x, params))

    ref = reference_attention_pool2d(x, params, num_heads)
    assert out.shape == (N, output_dim)
    # bf16 matmuls (f32 accumulation) + approx reciprocal => loosened tolerance.
    assert jnp.allclose(out, ref, atol=5e-2, rtol=5e-2), "kernel mismatch vs reference"

    print("KERNEL_OK")
</pallas_src>

<mosaic_0001>
module attributes {stable_mosaic.version = 11 : i64} {
  func.func @attention_pool_kernel(%arg0: i32, %arg1: memref<1x32x64xf32, #tpu.memory_space<vmem>>, %arg2: memref<64x32xf32, #tpu.memory_space<vmem>>, %arg3: memref<1x32xf32, #tpu.memory_space<vmem>>, %arg4: memref<32x96xbf16, #tpu.memory_space<vmem>>, %arg5: memref<1x96xf32, #tpu.memory_space<vmem>>, %arg6: memref<32x4xf32, #tpu.memory_space<vmem>>, %arg7: memref<4x32xf32, #tpu.memory_space<vmem>>, %arg8: memref<32x128xbf16, #tpu.memory_space<vmem>>, %arg9: memref<1x128xf32, #tpu.memory_space<vmem>>, %arg10: memref<1x1x128xf32, #tpu.memory_space<vmem>>) attributes {dimension_semantics = [#tpu.dimension_semantics<parallel>], iteration_bounds = array<i64: 2>, scalar_prefetch = 0 : i64, scratch_operands = 0 : i64, tpu.core_type = #tpu.core_type<tc>, window_params = [{transform_indices = @transform_0, window_bounds = array<i64: 1, 32, 64>}, {pipeline_mode = #tpu.pipeline_mode<synchronous>, transform_indices = @transform_1, window_bounds = array<i64: 64, 32>}, {pipeline_mode = #tpu.pipeline_mode<synchronous>, transform_indices = @transform_2, window_bounds = array<i64: 1, 32>}, {pipeline_mode = #tpu.pipeline_mode<synchronous>, transform_indices = @transform_3, window_bounds = array<i64: 32, 96>}, {pipeline_mode = #tpu.pipeline_mode<synchronous>, transform_indices = @transform_4, window_bounds = array<i64: 1, 96>}, {pipeline_mode = #tpu.pipeline_mode<synchronous>, transform_indices = @transform_5, window_bounds = array<i64: 32, 4>}, {pipeline_mode = #tpu.pipeline_mode<synchronous>, transform_indices = @transform_6, window_bounds = array<i64: 4, 32>}, {pipeline_mode = #tpu.pipeline_mode<synchronous>, transform_indices = @transform_7, window_bounds = array<i64: 32, 128>}, {pipeline_mode = #tpu.pipeline_mode<synchronous>, transform_indices = @transform_8, window_bounds = array<i64: 1, 128>}, {transform_indices = @transform_9, window_bounds = array<i64: 1, 1, 128>}]} {
    %c0 = arith.constant 0 : index
    %c0_0 = arith.constant 0 : index
    %c0_1 = arith.constant 0 : index
    %0 = vector.load %arg1[%c0, %c0_0, %c0_1] : memref<1x32x64xf32, #tpu.memory_space<vmem>>, vector<1x32x64xf32>
    %1 = tpu.transpose %0, [0, 2, 1] : vector<1x32x64xf32> -> vector<1x64x32xf32>
    %c0_2 = arith.constant 0 : index
    %c0_3 = arith.constant 0 : index
    %2 = vector.load %arg2[%c0_2, %c0_3] : memref<64x32xf32, #tpu.memory_space<vmem>>, vector<64x32xf32>
    %3 = vector.shape_cast %2 : vector<64x32xf32> to vector<1x64x32xf32>
    %4 = arith.addf %1, %3 : vector<1x64x32xf32>
    %cst = arith.constant dense<0.000000e+00> : vector<1x32xf32>
    %5 = vector.multi_reduction <add>, %1, %cst [1] : vector<1x64x32xf32> to vector<1x32xf32>
    %6 = vector.shape_cast %5 : vector<1x32xf32> to vector<1x1x32xf32>
    %cst_4 = arith.constant 6.400000e+01 : f32
    %7 = vector.broadcast %cst_4 : f32 to vector<1x1x32xf32>
    %8 = arith.divf %6, %7 : vector<1x1x32xf32>
    %c0_5 = arith.constant 0 : index
    %c0_6 = arith.constant 0 : index
    %9 = vector.load %arg3[%c0_5, %c0_6] : memref<1x32xf32, #tpu.memory_space<vmem>>, vector<1x32xf32>
    %10 = vector.shape_cast %9 : vector<1x32xf32> to vector<1x1x32xf32>
    %11 = arith.addf %8, %10 : vector<1x1x32xf32>
    %cst_7 = arith.constant 0.000000e+00 : f32
    %12 = vector.broadcast %cst_7 : f32 to vector<1x7x32xf32>
    %13 = tpu.concatenate %4, %11, %12 in 1 : vector<1x64x32xf32>, vector<1x1x32xf32>, vector<1x7x32xf32> -> vector<1x72x32xf32>
    %14 = vector.shape_cast %13 : vector<1x72x32xf32> to vector<72x32xf32>
    %15 = arith.truncf %14 : vector<72x32xf32> to vector<72x32xbf16>
    %c0_8 = arith.constant 0 : index
    %c0_9 = arith.constant 0 : index
    %16 = vector.load %arg4[%c0_8, %c0_9] : memref<32x96xbf16, #tpu.memory_space<vmem>>, vector<32x96xbf16>
    %cst_10 = arith.constant dense<0.000000e+00> : vector<72x96xf32>
    %17 = tpu.matmul %15, %16, %cst_10 {dimension_numbers = #tpu.dot_dimension_numbers<[1], [0], [0], [1], [0, 0, 1, 1], [], []>} : vector<72x32xbf16>, vector<32x96xbf16>, vector<72x96xf32> -> vector<72x96xf32>
    %c0_11 = arith.constant 0 : index
    %c0_12 = arith.constant 0 : index
    %18 = vector.load %arg5[%c0_11, %c0_12] : memref<1x96xf32, #tpu.memory_space<vmem>>, vector<1x96xf32>
    %19 = vector.broadcast %18 : vector<1x96xf32> to vector<72x96xf32>
    %20 = arith.addf %17, %19 : vector<72x96xf32>
    %21 = vector.shape_cast %20 : vector<72x96xf32> to vector<1x72x96xf32>
    %22 = vector.extract_strided_slice %21 {offsets = [0, 64, 0], sizes = [1, 1, 32], strides = [1, 1, 1]} : vector<1x72x96xf32> to vector<1x1x32xf32>
    %cst_13 = arith.constant 0.353553385 : f32
    %23 = vector.broadcast %cst_13 : f32 to vector<1x1x32xf32>
    %24 = arith.mulf %22, %23 : vector<1x1x32xf32>
    %25 = vector.extract_strided_slice %21 {offsets = [0, 0, 32], sizes = [1, 72, 32], strides = [1, 1, 1]} : vector<1x72x96xf32> to vector<1x72x32xf32>
    %26 = vector.extract_strided_slice %21 {offsets = [0, 0, 64], sizes = [1, 72, 32], strides = [1, 1, 1]} : vector<1x72x96xf32> to vector<1x72x32xf32>
    %27 = vector.broadcast %24 : vector<1x1x32xf32> to vector<1x72x32xf32>
    %28 = arith.mulf %25, %27 : vector<1x72x32xf32>
    %29 = vector.shape_cast %28 : vector<1x72x32xf32> to vector<72x32xf32>
    %c0_14 = arith.constant 0 : index
    %c0_15 = arith.constant 0 : index
    %30 = vector.load %arg6[%c0_14, %c0_15] : memref<32x4xf32, #tpu.memory_space<vmem>>, vector<32x4xf32>
    %cst_16 = arith.constant dense<0.000000e+00> : vector<72x4xf32>
    %31 = tpu.matmul %29, %30, %cst_16 {dimension_numbers = #tpu.dot_dimension_numbers<[1], [0], [0], [1], [0, 0, 1, 1], [], []>} : vector<72x32xf32>, vector<32x4xf32>, vector<72x4xf32> -> vector<72x4xf32>
    %32 = vector.shape_cast %31 : vector<72x4xf32> to vector<1x72x4xf32>
    %33 = tpu.iota {dimensions = array<i32: 1>} : vector<1x72x4xi32>
    %c65_i32 = arith.constant 65 : i32
    %34 = vector.broadcast %c65_i32 : i32 to vector<1x72x4xi32>
    %35 = arith.cmpi slt, %33, %34 : vector<1x72x4xi32>
    %cst_17 = arith.constant -1.000000e+30 : f32
    %36 = vector.broadcast %cst_17 : f32 to vector<1x72x4xf32>
    %37 = arith.select %35, %32, %36 : vector<1x72x4xi1>, vector<1x72x4xf32>
    %cst_18 = arith.constant dense<0xFF800000> : vector<1x4xf32>
    %38 = vector.multi_reduction <maximumf>, %37, %cst_18 [1] : vector<1x72x4xf32> to vector<1x4xf32>
    %39 = vector.shape_cast %38 : vector<1x4xf32> to vector<1x1x4xf32>
    %40 = vector.broadcast %39 : vector<1x1x4xf32> to vector<1x72x4xf32>
    %41 = arith.subf %37, %40 : vector<1x72x4xf32>
    %42 = math.exp %41 : vector<1x72x4xf32>
    %cst_19 = arith.constant dense<0.000000e+00> : vector<1x4xf32>
    %43 = vector.multi_reduction <add>, %42, %cst_19 [1] : vector<1x72x4xf32> to vector<1x4xf32>
    %44 = vector.shape_cast %43 : vector<1x4xf32> to vector<1x1x4xf32>
    %45 = tpu.reciprocal %44 {approx = true} : vector<1x1x4xf32> -> vector<1x1x4xf32>
    %46 = vector.broadcast %45 : vector<1x1x4xf32> to vector<1x72x4xf32>
    %47 = arith.mulf %42, %46 : vector<1x72x4xf32>
    %48 = vector.shape_cast %47 : vector<1x72x4xf32> to vector<72x4xf32>
    %c0_20 = arith.constant 0 : index
    %c0_21 = arith.constant 0 : index
    %49 = vector.load %arg7[%c0_20, %c0_21] : memref<4x32xf32, #tpu.memory_space<vmem>>, vector<4x32xf32>
    %cst_22 = arith.constant dense<0.000000e+00> : vector<72x32xf32>
    %50 = tpu.matmul %48, %49, %cst_22 {dimension_numbers = #tpu.dot_dimension_numbers<[1], [0], [0], [1], [0, 0, 1, 1], [], []>} : vector<72x4xf32>, vector<4x32xf32>, vector<72x32xf32> -> vector<72x32xf32>
    %51 = vector.shape_cast %50 : vector<72x32xf32> to vector<1x72x32xf32>
    %52 = arith.mulf %51, %26 : vector<1x72x32xf32>
    %cst_23 = arith.constant dense<0.000000e+00> : vector<1x32xf32>
    %53 = vector.multi_reduction <add>, %52, %cst_23 [1] : vector<1x72x32xf32> to vector<1x32xf32>
    %54 = arith.truncf %53 : vector<1x32xf32> to vector<1x32xbf16>
    %c0_24 = arith.constant 0 : index
    %c0_25 = arith.constant 0 : index
    %55 = vector.load %arg8[%c0_24, %c0_25] : memref<32x128xbf16, #tpu.memory_space<vmem>>, vector<32x128xbf16>
    %cst_26 = arith.constant dense<0.000000e+00> : vector<1x128xf32>
    %56 = tpu.matmul %54, %55, %cst_26 {dimension_numbers = #tpu.dot_dimension_numbers<[1], [0], [0], [1], [0, 0, 1, 1], [], []>} : vector<1x32xbf16>, vector<32x128xbf16>, vector<1x128xf32> -> vector<1x128xf32>
    %c0_27 = arith.constant 0 : index
    %c0_28 = arith.constant 0 : index
    %57 = vector.load %arg9[%c0_27, %c0_28] : memref<1x128xf32, #tpu.memory_space<vmem>>, vector<1x128xf32>
    %58 = arith.addf %56, %57 : vector<1x128xf32>
    %c0_29 = arith.constant 0 : index
    %c0_30 = arith.constant 0 : index
    %c0_31 = arith.constant 0 : index
    %59 = vector.load %arg10[%c0_29, %c0_30, %c0_31] : memref<1x1x128xf32, #tpu.memory_space<vmem>>, vector<1x1x128xf32>
    %60 = vector.shape_cast %59 : vector<1x1x128xf32> to vector<1x128xf32>
    %61 = vector.shape_cast %58 : vector<1x128xf32> to vector<1x1x128xf32>
    tpu.vector_store %arg10[%c0_29, %c0_30, %c0_31], %61 {strides = array<i32>} : memref<1x1x128xf32, #tpu.memory_space<vmem>>, vector<1x1x128xf32>,
    return
  }
  func.func @transform_0(%arg0: i32) -> (i32, i32, i32) {
    %c0_i32 = arith.constant 0 : i32
    %c0_i32_0 = arith.constant 0 : i32
    %c0_i32_1 = arith.constant 0 : i32
    return %arg0, %c0_i32, %c0_i32_0 : i32, i32, i32
  }
  func.func @transform_1(%arg0: i32) -> (i32, i32) {
    %c0_i32 = arith.constant 0 : i32
    %c0_i32_0 = arith.constant 0 : i32
    %c0_i32_1 = arith.constant 0 : i32
    return %c0_i32, %c0_i32_0 : i32, i32
  }
  func.func @transform_2(%arg0: i32) -> (i32, i32) {
    %c0_i32 = arith.constant 0 : i32
    %c0_i32_0 = arith.constant 0 : i32
    %c0_i32_1 = arith.constant 0 : i32
    return %c0_i32, %c0_i32_0 : i32, i32
  }
  func.func @transform_3(%arg0: i32) -> (i32, i32) {
    %c0_i32 = arith.constant 0 : i32
    %c0_i32_0 = arith.constant 0 : i32
    %c0_i32_1 = arith.constant 0 : i32
    return %c0_i32, %c0_i32_0 : i32, i32
  }
  func.func @transform_4(%arg0: i32) -> (i32, i32) {
    %c0_i32 = arith.constant 0 : i32
    %c0_i32_0 = arith.constant 0 : i32
    %c0_i32_1 = arith.constant 0 : i32
    return %c0_i32, %c0_i32_0 : i32, i32
  }
  func.func @transform_5(%arg0: i32) -> (i32, i32) {
    %c0_i32 = arith.constant 0 : i32
    %c0_i32_0 = arith.constant 0 : i32
    %c0_i32_1 = arith.constant 0 : i32
    return %c0_i32, %c0_i32_0 : i32, i32
  }
  func.func @transform_6(%arg0: i32) -> (i32, i32) {
    %c0_i32 = arith.constant 0 : i32
    %c0_i32_0 = arith.constant 0 : i32
    %c0_i32_1 = arith.constant 0 : i32
    return %c0_i32, %c0_i32_0 : i32, i32
  }
  func.func @transform_7(%arg0: i32) -> (i32, i32) {
    %c0_i32 = arith.constant 0 : i32
    %c0_i32_0 = arith.constant 0 : i32
    %c0_i32_1 = arith.constant 0 : i32
    return %c0_i32, %c0_i32_0 : i32, i32
  }
  func.func @transform_8(%arg0: i32) -> (i32, i32) {
    %c0_i32 = arith.constant 0 : i32
    %c0_i32_0 = arith.constant 0 : i32
    %c0_i32_1 = arith.constant 0 : i32
    return %c0_i32, %c0_i32_0 : i32, i32
  }
  func.func @transform_9(%arg0: i32) -> (i32, i32, i32) {
    %c0_i32 = arith.constant 0 : i32
    %c0_i32_0 = arith.constant 0 : i32
    %c0_i32_1 = arith.constant 0 : i32
    return %arg0, %c0_i32, %c0_i32_0 : i32, i32, i32
  }
}

</mosaic_0001>

<bundles_post_ra>
// kernel: attention_pool2d.1
= control target key start
LH: loop header
LB: loop body
LE: loop exit
PB: predicated region body
PF: predicated region fallthrough
CT: control target
= control target key end

     0   :  { %14 = vsyncpa [#allocation3], 0  ;;  %s1820_s0 = inlined_call_operand.vmem [shape: f32[2,32,64], index: 0, kind: input, shape index: {}]   ;;  %s1821_s1 = inlined_call_operand.vmem [shape: f32[64,32], index: 1, kind: input, shape index: {}]   ;;  %s1822_s2 = inlined_call_operand.vmem [shape: f32[1,32], index: 2, kind: input, shape index: {}]   ;;  %s1823_s3 = inlined_call_operand.vmem [shape: bf16[32,96], index: 3, kind: input, shape index: {}]   ;;  %s1824_s4 = inlined_call_operand.vmem [shape: f32[1,96], index: 4, kind: input, shape index: {}]   ;;  %s1825_s5 = inlined_call_operand.vmem [shape: f32[32,4], index: 5, kind: input, shape index: {}]   ;;  %s1826_s6 = inlined_call_operand.vmem [shape: f32[4,32], index: 6, kind: input, shape index: {}]   ;;  %s1827_s7 = inlined_call_operand.vmem [shape: bf16[32,128], index: 7, kind: input, shape index: {}]   ;;  %s1828_s8 = inlined_call_operand.vmem [shape: f32[1,128], index: 8, kind: input, shape index: {}]   ;;  %s1829_s9 = inlined_call_operand.hbm [shape: f32[2,1,128], index: 9, kind: output, shape index: {}]  }
   0x1   :  { %16 = vsyncpa [#allocation3 + $0x1], 0  ;;  %s1524_s30 = smov 0   ;;  %s1526_s10 = smov 0  }
   0x2   :  { %s1528_s11 = smov 0   ;;  %s1530_s12 = smov 0  }
   0x3 LB: > { %s1545_s13 = sadd.s32 4294967295, %s1465_s12   ;;  %s1155_s14 = sadd.s32 4294967294, %s1465_s12   ;;  %s1465_s12 = sphi %s1530_s12, %s1835_s12   ;;  %s1461_s11 = sphi %s1528_s11, %s1834_s11   ;;  %s1457_s10 = sphi %s1526_s10, %s1833_s10   ;;  %s1453_s30 = sphi %s1524_s30, %s1832_s30  }
   0x4   : > { %s1549_s15 = sadd.s32 1, %s1465_s12   ;;  %s223_s16 = sadd.s32 1, %s1461_s11 }
   0x5   : > { %s220_s17 = ssub.s32 %s1465_s12, %s1549_s15  ;;  %p233_p0 = scmp.ne.s32.totalorder %s1461_s11, %s1457_s10 }
   0x6   : > { %p221_p1 = scmp.eq.s32.totalorder %s220_s17, 0  ;;  %p234_p2 = scmp.eq.s32.totalorder %s1545_s13, 1 }
   0x7   : > { %p239_p3 = scmp.ne.s32.totalorder %s1457_s10, %s1453_s30  ;;  %p240_p4 = scmp.eq.s32.totalorder %s1155_s14, 1 }
   0x8   : > { %s1560_s18 = scalar_select %p221_p1, %s1461_s11, %s223_s16  }
   0x9   : > { %p1562_p5 = por %p234_p2, %p233_p0  ;;  %p1566_p6 = por %p240_p4, %p239_p3 }
   0xa   : > { %p1158_p7 = scmp.ge.s32.totalorder %s1465_s12, 1  ;;  %p290_p8 = scmp.lt.s32.totalorder %s1465_s12, 3 }
   0xc   : > { %p291_p9 = pnand %p1158_p7, %p290_p8 }
   0xd   : > { %p325_p10 = scmp.lt.s32.totalorder (!%p291_p9), %s1545_s13, 1  ;;  %v1379_v1 = vld [vmem:[%s1823_s3] sm:$0xff] (!%p291_p9)   ;;  %v1467_v3 = vmov (!%p291_p9), 0.0   ;;  %v1380_v4 = vld [vmem:[%s1823_s3 + $0x8] sm:$0xff] (!%p291_p9)   ;;  %vm1468_vm0 = vmmov (!%p291_p9), 0   ;;  %vm383_vm1 = vcmask (!%p291_p9), 261120  }
   0xe   : > { %294 = sbr.rel (%p291_p9) target bundleno = 1463 (0x5b7), region = 56  ;;  %1228 = vmatprep.subr.bf16.mxu0 (!%p291_p9), %v1467_v3  ;;  %1232 = vmatprep.mubr.msk.bf16.mxu0 (!%p291_p9), %vm1468_vm0, %v1467_v3  ;;  %v367_v8 = vld [vmem:[%s1821_s1] sm:$0xff] (!%p291_p9)  ;;  %v368_v9 = vld [vmem:[%s1821_s1 + $0x8] sm:$0xff] (!%p291_p9)  ;;  %v369_v15 = vld [vmem:[%s1821_s1 + $0x10] sm:$0xff] (!%p291_p9)  ;;  %vm409_vm2 = vcmask (!%p291_p9), 1040384   ;;  %s1469_s26 = smov (!%p291_p9), 32  }
   0xf   : > { %1229 = vmatpush3.bf16.msra.mxu0 (!%p291_p9), %v1379_v1  ;;  %1269 = vmatprep.mubr.msk.f32.mxu1 (!%p291_p9), %vm1468_vm0, %v1467_v3  ;;  %v370_v16 = vld [vmem:[%s1821_s1 + $0x18] sm:$0xff] (!%p291_p9)  ;;  %v371_v26 = vld [vmem:[%s1821_s1 + $0x20] sm:$0xff] (!%p291_p9)  ;;  %v372_v27 = vld [vmem:[%s1821_s1 + $0x28] sm:$0xff] (!%p291_p9)  ;;  %s1471_s23 = smov (!%p291_p9), 96   ;;  %s1472_s24 = smov (!%p291_p9), 64   ;;  %vm843_vm3 = vcmask (!%p291_p9), 1043456  }
  0x10   : > { %1230 = vmatprep.subr.bf16.mxu0 (!%p291_p9), %v1467_v3  ;;  %v373_v41 = vld [vmem:[%s1821_s1 + $0x30] sm:$0xff] (!%p291_p9)  ;;  %v374_v42 = vld [vmem:[%s1821_s1 + $0x38] sm:$0xff] (!%p291_p9)  ;;  %v407_v56 = vld [vmem:[%s1822_s2] sm:$0x1] (!%p291_p9)  ;;  %vm731_vm4 = vcmask (!%p291_p9), 31744   ;;  %s323_s16 = sand.u32 (!%p291_p9), 1, %s1457_s10  }
  0x11   : > { %v1161_v61 = vld [vmem:[%s1824_s4] ss:$0 sm:$0xff] (!%p291_p9)  ;;  %s1088_s28 = scalar_lea.sflag (!%p291_p9), [#allocation3], %s323_s16  ;;  %s1473_s29 = smov (!%p291_p9), [#allocation2]  }
  0x12   : > { %s1407_s14 = sshll.u32 (!%p291_p9), %s1473_s29, 4  ;;  %s1408_s14 = int_to_ptr.vmem [resolvable:$false] %s1407_s14 }
  0x13   : > { %1231 = vmatpush3.bf16.msra.mxu0 (!%p291_p9), %v1380_v4  ;;  %s1409_s17 = scalar_lea.vmem (!%p291_p9), %s1408_s14, 32 }
  0x15   : > { %s326_s21 = scalar_select %p325_p10, %s1545_s13, 1 }
  0x17   : > { %s1194_s22 = sshll.u32 %s326_s21, 5 }
  0x18   : > { %s329_s25 = scalar_lea.vmem %s1820_s0, %s1194_s22  ;;  %s1191_s22 = sshll.u32 %s1545_s13, 4 }
  0x19   : > { %v331_v0 = vld [vmem:[%s329_s25] sm:$0xff]  ;;  %v332_v2 = vld [vmem:[%s329_s25 + $0x8] sm:$0xff]  ;;  %v333_v5 = vld [vmem:[%s329_s25 + $0x10] sm:$0xff]  ;;  %s1778_s27 = scalar_lea.hbm %s1829_s9, %s1191_s22 }
  0x1a   : > { %335 = vxpose.xlu0.b32.start [1/4] (short) (narrow) %v331_v0, 64  ;;  %v334_v6 = vld [vmem:[%s329_s25 + $0x18] sm:$0xff] }
  0x1e   : > { %336 = vxpose.xlu0.b32.cont [2/4] (short) (narrow) %v332_v2, 64 }
  0x22   : > { %337 = vxpose.xlu0.b32.cont [3/4] (short) (narrow) %v333_v5, 64 }
  0x26   : > { %338 = vxpose.xlu0.b32.end [4/4] (short) (narrow) %v334_v6, 64 }
  0x9a   : > { %v351_v7 = vpop.trf.xlu0 }
  0x9b   : > { %v375_v11 = vadd.f32 %v367_v8, %v351_v7  ;;  %v384_v23 = vsel %vm383_vm1, %v351_v7, 0.0 }
  0x9e   : > { %v352_v10 = vpop.trf.xlu0 }
  0x9f   : > { %v376_v12 = vadd.f32 %v368_v9, %v352_v10  ;;  %v385_v20 = vsel %vm383_vm1, %v352_v10, 0.0 }
  0xa0   : > { %v386_v25 = vadd.f32 %v385_v20, %v384_v23  ;;  %v527_v23 = vlaneseq }
  0xa1   : > { %v411_v13 = vpack.c.bf16 %v376_v12, %v375_v11 }
  0xa2   : > { %v353_v14 = vpop.trf.xlu0 }
  0xa3   : > { %1233 = vmatmul.mubr.msk.bf16.vlgmr.msra.gmra.mrb[0].mxu0 %vm383_vm1, %v411_v13  ;;  %v377_v18 = vadd.f32 %v369_v15, %v353_v14  ;;  %v387_v24 = vsel %vm383_vm1, %v353_v14, 0.0 }
  0xa4   : > { %1236 = vmatprep.mubr.msk.bf16.mxu0 %vm1468_vm0, %v1467_v3  ;;  %v388_v29 = vadd.f32 %v387_v24, %v386_v25  ;;  %v1652_v24 = vshrl.u32 %v527_v23, 7 }
  0xa6   : > { %v354_v17 = vpop.trf.xlu0 }
  0xa7   : > { %v378_v19 = vadd.f32 %v370_v16, %v354_v17  ;;  %v389_v28 = vsel %vm383_vm1, %v354_v17, 0.0 }
  0xa8   : > { %v390_v34 = vadd.f32 %v389_v28, %v388_v29  ;;  %v529_v28 = vsub.s32 0, %v1652_v24 }
  0xa9   : > { %v412_v21 = vpack.c.bf16 %v378_v19, %v377_v18 }
  0xaa   : > { %v355_v22 = vpop.trf.xlu0 }
  0xab   : > { %1237 = vmatmul.mubr.msk.bf16.gmra.mrb[4].mxu0 %vm383_vm1, %v412_v21  ;;  %v379_v31 = vadd.f32 %v371_v26, %v355_v22  ;;  %v391_v32 = vsel %vm383_vm1, %v355_v22, 0.0 }
  0xac   : > { %1240 = vmatprep.mubr.msk.bf16.mxu0 %vm1468_vm0, %v1467_v3  ;;  %v392_v37 = vadd.f32 %v391_v32, %v390_v34  ;;  %v545_v34 = vld [vmem:[%s1825_s5 + $0x8] sm:$0xff] }
  0xae   : > { %v356_v30 = vpop.trf.xlu0 }
  0xaf   : > { %v380_v33 = vadd.f32 %v372_v27, %v356_v30  ;;  %v393_v35 = vsel %vm383_vm1, %v356_v30, 0.0 }
  0xb0   : > { %v394_v40 = vadd.f32 %v393_v35, %v392_v37  ;;  %v546_v35 = vld [vmem:[%s1825_s5 + $0x10] sm:$0xff] }
  0xb1   : > { %v413_v36 = vpack.c.bf16 %v380_v33, %v379_v31  ;;  %v544_v33 = vld [vmem:[%s1825_s5] sm:$0xff] }
  0xb2   : > { %v357_v38 = vpop.trf.xlu0  ;;  %v1325_v37 = vpack.c.bf16 %v545_v34, %v544_v33 }
  0xb3   : > { %v395_v39 = vsel %vm383_vm1, %v357_v38, 0.0  ;;  %1241 = vmatmul.mubr.msk.bf16.gmra.mrb[8].mxu0 %vm383_vm1, %v413_v36  ;;  %v381_v45 = vadd.f32 %v373_v41, %v357_v38  ;;  %v1470_v36 = vmov 0.0|0.0   ;;  %v547_v38 = vld [vmem:[%s1825_s5 + $0x18] sm:$0xff] }
  0xb4   : > { %1244 = vmatprep.mubr.msk.bf16.mxu0 %vm1468_vm0, %v1467_v3  ;;  %v396_v43 = vadd.f32 %v395_v39, %v394_v40  ;;  %1324 = vmatprep.subr.bf16.mxu0 %v1470_v36  ;;  %v1328_v39 = vpack.c.bf16 %v547_v38, %v546_v35 }
  0xb5   : > { %1330 = vmatprep.subr.bf16.mxu1 %v1470_v36  ;;  %1326 = vmatpush3.bf16.msra.mxu0 %v1325_v37 }
  0xb6   : > { %v358_v44 = vpop.trf.xlu0  ;;  %1332 = vmatpush3.bf16.msra.mxu1 %v1325_v37  ;;  %1327 = vmatprep.subr.bf16.mxu0 %v1470_v36 }
  0xb7   : > { %v382_v46 = vadd.f32 %v374_v42, %v358_v44  ;;  %v397_v47 = vsel %vm383_vm1, %v358_v44, 0.0  ;;  %1331 = vmatprep.subr.bf16.mxu1 %v1470_v36 }
  0xb8   : > { %v398_v48 = vadd.f32 %v397_v47, %v396_v43 }
  0xb9   : > { %v414_v49 = vpack.c.bf16 %v382_v46, %v381_v45  ;;  %1329 = vmatpush3.bf16.msra.mxu0 %v1328_v39 }
  0xba   : > { %v399_v50 = vrot.slane %v398_v48, 4  ;;  %1333 = vmatpush3.bf16.msra.mxu1 %v1328_v39  ;;  %1316 = vmatprep.subr.bf16.mxu0 %v1467_v3 }
  0xbb   : > { %1245 = vmatmul.mubr.msk.bf16.gmra.mrb[12].mxu0 %vm383_vm1, %v414_v49  ;;  %1287 = vmatprep.subr.mxu1 %v1467_v3 }
  0xbc   : > { %v400_v51 = vadd.f32 %v399_v50, %v398_v48  ;;  %1248 = vmatprep.mubr.msk.bf16.mxu0 %vm1468_vm0, %v1467_v3 }
  0xbe   : > { %v401_v52 = vrot.slane %v400_v51, 2 }
  0xc0   : > { %v402_v53 = vadd.f32 %v401_v52, %v400_v51 }
  0xc2   : > { %v403_v54 = vrot.slane %v402_v53, 1 }
  0xc4   : > { %v404_v55 = vadd.f32 %v403_v54, %v402_v53 }
  0xc6   : > { %v406_v57 = vmul.f32 0.015625, %v404_v55 }
  0xc8   : > { %v408_v58 = vadd.f32 %v407_v56, %v406_v57 }
  0xca   : > { %v410_v59 = vsel %vm409_vm2, %v408_v58, 0.0 }
  0xcb   : > { %v415_v60 = vpack.c.bf16 %v410_v59, %v410_v59  ;;  %v815_v59 = vld [vmem:[%s1826_s6] sm:$0xf] }
  0xcd   : > { %1249 = vmatmul.mubr.msk.bf16.gmra.mrb[16].mxu0 %vm383_vm1, %v415_v60 }
  0xce   : > { %1260 = vmatprep.mubr.msk.f32.mxu0 %vm1468_vm0, %v1467_v3 }
 0x176   : > { %v488_v62 = vpop.f32.mrb[0].mxu0 }
 0x177   : > { %v1642_v63 = vadd.f32 %v1161_v61, %v488_v62  ;;  %v1234_v0 = vpop.f32.mrb[1].mxu0 }
 0x178   : > { %v491_v1 = vpop.f32.mrb[2].mxu0 }
 0x179   : > { %v1644_v2 = vadd.f32 %v1161_v61, %v491_v1  ;;  %v1235_v4 = vpop.f32.mrb[3].mxu0 }
 0x17e   : > { %v496_v5 = vpop.f32.mrb[4].mxu0 }
 0x17f   : > { %v1646_v6 = vadd.f32 %v1161_v61, %v496_v5  ;;  %v1238_v7 = vpop.f32.mrb[5].mxu0 }
 0x180   : > { %v499_v8 = vpop.f32.mrb[6].mxu0 }
 0x181   : > { %v1648_v9 = vadd.f32 %v1161_v61, %v499_v8  ;;  %v1239_v10 = vpop.f32.mrb[7].mxu0 }
 0x186   : > { %v504_v11 = vpop.f32.mrb[8].mxu0 }
 0x187   : > { %v1650_v12 = vadd.f32 %v1161_v61, %v504_v11  ;;  %v1242_v13 = vpop.f32.mrb[9].mxu0 }
 0x188   : > { %v507_v14 = vpop.f32.mrb[10].mxu0 }
 0x189   : > { %v508_v15 = vadd.f32 %v1161_v61, %v507_v14  ;;  %v1243_v16 = vpop.f32.mrb[11].mxu0 }
 0x18e   : > { %v512_v17 = vpop.f32.mrb[12].mxu0 }
 0x18f   : > { %v513_v18 = vadd.f32 %v1161_v61, %v512_v17  ;;  %v1246_v19 = vpop.f32.mrb[13].mxu0 }
 0x190   : > { %v515_v20 = vpop.f32.mrb[14].mxu0 }
 0x191   : > { %v516_v21 = vadd.f32 %v1161_v61, %v515_v20  ;;  %v1247_v22 = vpop.f32.mrb[15].mxu0 }
 0x1a0   : > { %v520_v25 = vpop.f32.mrb[16].mxu0 }
 0x1a1   : > { %v521_v26 = vadd.f32 %v1161_v61, %v520_v25  ;;  %v1250_v27 = vpop.f32.mrb[17].mxu0 }
 0x1a2   : > { %v523_v29 = vpop.f32.mrb[18].mxu0 }
 0x1a3   : > { %v1251_v30 = vpop.f32.mrb[19].mxu0  ;;  %v526_v31 = vmul.f32 0.35355338, %v521_v26 }
 0x1a5   : > { %v530_v32 = vrot.slane %v526_v31, %v529_v28 }
 0x1a7   : > { %532 = vrot.lane.b32.xlu1 %v530_v32, %s1469_s26 }
 0x219   : > { %v533_v40 = vpop.permute.xlu1 %532 }
 0x21a   : > { %v541_v41 = vmul.f32 %v533_v40, %v513_v18  ;;  %v538_v42 = vmul.f32 %v533_v40, %v1648_v9  ;;  %v539_v43 = vmul.f32 %v533_v40, %v1650_v12  ;;  %v540_v44 = vmul.f32 %v533_v40, %v508_v15 }
 0x21b   : > { %v535_v45 = vmul.f32 %v533_v40, %v1642_v63  ;;  %v542_v46 = vmul.f32 %v533_v40, %v516_v21  ;;  %v536_v47 = vmul.f32 %v533_v40, %v1644_v2  ;;  %v543_v48 = vmul.f32 %v533_v40, %v521_v26 }
 0x21c   : > { %569 = vrot.lane.b32.xlu0 %v541_v41, %s1471_s23  ;;  %563 = vrot.lane.b32.xlu1 %v538_v42, %s1471_s23  ;;  %v537_v49 = vmul.f32 %v533_v40, %v1646_v6 }
 0x220   : > { %565 = vrot.lane.b32.xlu1 %v539_v43, %s1471_s23 }
 0x224   : > { %567 = vrot.lane.b32.xlu1 %v540_v44, %s1471_s23 }
 0x228   : > { %557 = vrot.lane.b32.xlu1 %v535_v45, %s1471_s23 }
 0x22c   : > { %571 = vrot.lane.b32.xlu1 %v542_v46, %s1471_s23 }
 0x230   : > { %559 = vrot.lane.b32.xlu1 %v536_v47, %s1471_s23 }
 0x234   : > { %573 = vrot.lane.b32.xlu1 %v543_v48, %s1471_s23 }
 0x238   : > { %561 = vrot.lane.b32.xlu1 %v537_v49, %s1471_s23  ;;  %s324_s23 = scalar_lea.vmem [#allocation2], %s323_s16 }
 0x23c   : > { %966 = vrot.lane.b32.xlu1 %v1642_v63, %s1472_s24 }
 0x240   : > { %968 = vrot.lane.b32.xlu1 %v1644_v2, %s1472_s24 }
 0x244   : > { %970 = vrot.lane.b32.xlu1 %v1646_v6, %s1472_s24 }
 0x248   : > { %972 = vrot.lane.b32.xlu1 %v1648_v9, %s1472_s24 }
 0x24c   : > { %974 = vrot.lane.b32.xlu1 %v1650_v12, %s1472_s24 }
 0x250   : > { %976 = vrot.lane.b32.xlu1 %v508_v15, %s1472_s24  ;;  %v712_v15 = vadd.s32 64, %v1652_v24 }
 0x252   : > { %vm721_vm5 = vcmp.lt.s32.totalorder %v712_v15, 65 }
 0x254   : > { %978 = vrot.lane.b32.xlu1 %v513_v18, %s1472_s24 }
 0x258   : > { %980 = vrot.lane.b32.xlu1 %v516_v21, %s1472_s24 }
 0x25c   : > { %982 = vrot.lane.b32.xlu1 %v521_v26, %s1472_s24  ;;  %s1100_s24 = sshll.u32 %s324_s23, 4  ;;  %s1780_s24 = int_to_ptr.vmem [resolvable:$true] %s1100_s24 }
 0x25d   : > { %s1403_s13 = scalar_lea.vmem %s1780_s24, 16  ;;  %p1410_p0 = scmp.lt.s32.totalorder %s1780_s24, %s1408_s14 }
 0x25e   : > { %p1404_p11 = scmp.ne.s32.totalorder %s1780_s24, %s1403_s13  ;;  %p1411_p1 = scmp.lt.s32.totalorder %s1409_s17, %s1403_s13 }
 0x260   : > { %p1405_p12 = pnand %p1404_p11, %p1562_p5  ;;  %p1412_p2 = por %p1411_p1, %p1410_p0 }
 0x262   : > { %p1406_p13 = pneg %p1405_p12 }
 0x264   : > { %p1413_p3 = pnand %p1412_p2, %p1406_p13 }
 0x28e   : > { %v564_v50 = vpop.permute.xlu1 %563  ;;  %v570_v53 = vpop.permute.xlu0 %569 }
 0x28f   : > { %1270 = vmatmul.mubr.msk.f32.vlgmr.msra.gmra.mrb[0].mxu1 %vm383_vm1, %v564_v50 }
 0x290   : > { %1272 = vmatprep.mubr.msk.f32.mxu1 %vm1468_vm0, %v1467_v3  ;;  %1288 = vmatpush3.msk.msra.mxu1 %vm843_vm3, %v815_v59 }
 0x292   : > { %v566_v51 = vpop.permute.xlu1 %565 }
 0x293   : > { %1273 = vmatmul.mubr.msk.f32.gmra.mrb[2].mxu1 %vm383_vm1, %v566_v51 }
 0x294   : > { %1275 = vmatprep.mubr.msk.f32.mxu1 %vm1468_vm0, %v1467_v3 }
 0x296   : > { %v568_v52 = vpop.permute.xlu1 %567 }
 0x297   : > { %1276 = vmatmul.mubr.msk.f32.gmra.mrb[4].mxu1 %vm383_vm1, %v568_v52 }
 0x298   : > { %1278 = vmatprep.mubr.msk.f32.mxu1 %vm1468_vm0, %v1467_v3 }
 0x29a   : > { %v558_v54 = vpop.permute.xlu1 %557 }
 0x29b   : > { %1261 = vmatmul.mubr.msk.f32.vlgmr.msra.gmra.mrb[20].mxu0 %vm383_vm1, %v558_v54  ;;  %1279 = vmatmul.mubr.msk.f32.gmra.mrb[6].mxu1 %vm383_vm1, %v570_v53 }
 0x29c   : > { %1281 = vmatprep.mubr.msk.f32.mxu1 %vm1468_vm0, %v1467_v3  ;;  %1263 = vmatprep.mubr.msk.f32.mxu0 %vm1468_vm0, %v1467_v3 }
 0x29e   : > { %v572_v55 = vpop.permute.xlu1 %571 }
 0x29f   : > { %1282 = vmatmul.mubr.msk.f32.gmra.mrb[8].mxu1 %vm383_vm1, %v572_v55 }
 0x2a0   : > { %1284 = vmatprep.mubr.msk.f32.mxu1 %vm1468_vm0, %v1467_v3 }
 0x2a2   : > { %v560_v56 = vpop.permute.xlu1 %559 }
 0x2a3   : > { %1264 = vmatmul.mubr.msk.f32.gmra.mrb[22].mxu0 %vm383_vm1, %v560_v56 }
 0x2a4   : > { %1266 = vmatprep.mubr.msk.f32.mxu0 %vm1468_vm0, %v1467_v3 }
 0x2a6   : > { %v574_v57 = vpop.permute.xlu1 %573 }
 0x2a7   : > { %1285 = vmatmul.mubr.msk.f32.gmra.mrb[10].mxu1 %vm383_vm1, %v574_v57 }
 0x2a8   : > { %1289 = vmatprep.mubr.msk.f32.mxu1 %vm1468_vm0, %v1467_v3 }
 0x2aa   : > { %v562_v58 = vpop.permute.xlu1 %561 }
 0x2ab   : > { %1267 = vmatmul.mubr.msk.f32.gmra.mrb[24].mxu0 %vm383_vm1, %v562_v58 }
 0x2ac   : > { %1320 = vmatprep.mubr.msk.bf16.mxu0 %vm1468_vm0, %v1467_v3 }
 0x362   : > { %v674_v60 = vpop.f32.mrb[0].mxu1 }
 0x363   : > { %v1271_v61 = vpop.f32.mrb[1].mxu1  ;;  %v735_v11 = vsel %vm731_vm4, %v674_v60, -inf }
 0x366   : > { %v679_v62 = vpop.f32.mrb[2].mxu1 }
 0x367   : > { %v1274_v63 = vpop.f32.mrb[3].mxu1  ;;  %v736_v5 = vsel %vm731_vm4, %v679_v62, -inf }
 0x36a   : > { %v684_v0 = vpop.f32.mrb[4].mxu1 }
 0x36b   : > { %v1277_v1 = vpop.f32.mrb[5].mxu1  ;;  %v738_v17 = vsel %vm731_vm4, %v684_v0, -inf }
 0x36e   : > { %v659_v2 = vpop.f32.mrb[20].mxu0  ;;  %v689_v4 = vpop.f32.mrb[6].mxu1 }
 0x36f   : > { %v732_v6 = vsel %vm731_vm4, %v659_v2, -inf  ;;  %v1262_v7 = vpop.f32.mrb[21].mxu0  ;;  %v1280_v8 = vpop.f32.mrb[7].mxu1  ;;  %v740_v28 = vsel %vm731_vm4, %v689_v4, -inf }
 0x370   : > { %v737_v9 = vmax.f32 %v732_v6, %v736_v5 }
 0x372   : > { %v694_v10 = vpop.f32.mrb[8].mxu1 }
 0x373   : > { %v742_v12 = vsel %vm731_vm4, %v694_v10, -inf  ;;  %v1283_v13 = vpop.f32.mrb[9].mxu1 }
 0x374   : > { %v743_v14 = vmax.f32 %v735_v11, %v742_v12 }
 0x376   : > { %v664_v16 = vpop.f32.mrb[22].mxu0 }
 0x377   : > { %v733_v18 = vsel %vm731_vm4, %v664_v16, -inf  ;;  %v1265_v19 = vpop.f32.mrb[23].mxu0 }
 0x378   : > { %v739_v20 = vmax.f32 %v733_v18, %v738_v17 }
 0x37a   : > { %v699_v21 = vpop.f32.mrb[10].mxu1 }
 0x37b   : > { %v730_v22 = vsel %vm721_vm5, %v699_v21, -1e+30  ;;  %v1286_v23 = vpop.f32.mrb[11].mxu1 }
 0x37c   : > { %v744_v25 = vsel %vm731_vm4, %v730_v22, -inf }
 0x37d   : > { %v745_v26 = vmax.f32 %v737_v9, %v744_v25 }
 0x37e   : > { %v669_v27 = vpop.f32.mrb[24].mxu0 }
 0x37f   : > { %v746_v29 = vmax.f32 %v745_v26, %v739_v20  ;;  %v734_v24 = vsel %vm731_vm4, %v669_v27, -inf  ;;  %v1268_v30 = vpop.f32.mrb[25].mxu0 }
 0x380   : > { %v741_v31 = vmax.f32 %v734_v24, %v740_v28 }
 0x382   : > { %v747_v32 = vmax.f32 %v741_v31, %v743_v14 }
 0x384   : > { %v748_v33 = vmax.f32 %v746_v29, %v747_v32 }
 0x386   : > { %v749_v34 = vrot.slane %v748_v33, 4 }
 0x388   : > { %v750_v35 = vmax.f32 %v748_v33, %v749_v34 }
 0x38a   : > { %v751_v36 = vrot.slane %v750_v35, 2 }
 0x38c   : > { %v752_v37 = vmax.f32 %v750_v35, %v751_v36 }
 0x38e   : > { %v753_v38 = vrot.slane %v752_v37, 1 }
 0x390   : > { %v754_v39 = vmax.f32 %v752_v37, %v753_v38  ;;  %v1381_v37 = vld [vmem:[%s1827_s7] sm:$0xff]   ;;  %v1382_v38 = vld [vmem:[%s1827_s7 + $0x8] sm:$0xff]  }
 0x391   : > { %1317 = vmatpush3.bf16.msra.mxu0 %v1381_v37 }
 0x392   : > { %v755_v40 = vsub.f32 %v659_v2, %v754_v39  ;;  %v756_v41 = vsub.f32 %v664_v16, %v754_v39  ;;  %v757_v42 = vsub.f32 %v669_v27, %v754_v39  ;;  %v758_v43 = vsub.f32 %v674_v60, %v754_v39  ;;  %1318 = vmatprep.subr.bf16.mxu0 %v1467_v3 }
 0x393   : > { %v759_v44 = vsub.f32 %v679_v62, %v754_v39  ;;  %v760_v45 = vsub.f32 %v684_v0, %v754_v39  ;;  %v761_v46 = vsub.f32 %v689_v4, %v754_v39  ;;  %v762_v47 = vsub.f32 %v694_v10, %v754_v39 }
 0x394   : > { %v763_v48 = vsub.f32 %v730_v22, %v754_v39  ;;  %v764_v49 = vmul.f32 1.442695, %v755_v40  ;;  %v766_v50 = vmul.f32 1.442695, %v756_v41  ;;  %v768_v51 = vmul.f32 1.442695, %v757_v42  ;;  %v967_v39 = vpop.permute.xlu1 %966 }
 0x395   : > { %v770_v52 = vmul.f32 1.442695, %v758_v43  ;;  %v772_v53 = vmul.f32 1.442695, %v759_v44  ;;  %v774_v54 = vmul.f32 1.442695, %v760_v45  ;;  %1319 = vmatpush3.bf16.msra.mxu0 %v1382_v38 }
 0x396   : > { %1383 = vpow2.f32 %v764_v49  ;;  %v776_v55 = vmul.f32 1.442695, %v761_v46  ;;  %v778_v56 = vmul.f32 1.442695, %v762_v47  ;;  %v780_v57 = vmul.f32 1.442695, %v763_v48 }
 0x397   : > { %1385 = vpow2.f32 %v766_v50 }
 0x398   : > { %1387 = vpow2.f32 %v768_v51  ;;  %v969_v40 = vpop.permute.xlu1 %968 }
 0x399   : > { %1389 = vpow2.f32 %v770_v52 }
 0x39a   : > { %1391 = vpow2.f32 %v772_v53 }
 0x39b   : > { %1393 = vpow2.f32 %v774_v54 }
 0x39c   : > { %1395 = vpow2.f32 %v776_v55  ;;  %v971_v41 = vpop.permute.xlu1 %970 }
 0x39d   : > { %1397 = vpow2.f32 %v778_v56 }
 0x39e   : > { %1399 = vpow2.f32 %v780_v57 }
 0x3a0   : > { %v1384_v58 = vpop.eup %1383  ;;  %v973_v44 = vpop.permute.xlu1 %972 }
 0x3a1   : > { %v1386_v59 = vpop.eup %1385  ;;  %v782_v60 = vsel %vm731_vm4, %v1384_v58, 0.0 }
 0x3a2   : > { %v1388_v61 = vpop.eup %1387  ;;  %v783_v62 = vsel %vm731_vm4, %v1386_v59, 0.0 }
 0x3a3   : > { %v1390_v63 = vpop.eup %1389  ;;  %v784_v0 = vadd.f32 %v783_v62, %v782_v60  ;;  %v785_v1 = vsel %vm731_vm4, %v1388_v61, 0.0 }
 0x3a4   : > { %v1392_v2 = vpop.eup %1391  ;;  %v787_v5 = vsel %vm731_vm4, %v1390_v63, 0.0  ;;  %v975_v51 = vpop.permute.xlu1 %974 }
 0x3a5   : > { %v786_v4 = vadd.f32 %v785_v1, %v784_v0  ;;  %v1394_v6 = vpop.eup %1393  ;;  %v789_v8 = vsel %vm731_vm4, %v1392_v2, 0.0 }
 0x3a6   : > { %v1396_v9 = vpop.eup %1395  ;;  %v791_v11 = vsel %vm731_vm4, %v1394_v6, 0.0 }
 0x3a7   : > { %v788_v7 = vadd.f32 %v787_v5, %v786_v4  ;;  %v1398_v12 = vpop.eup %1397  ;;  %v793_v14 = vsel %vm731_vm4, %v1396_v9, 0.0 }
 0x3a8   : > { %v1400_v15 = vpop.eup %1399  ;;  %v795_v17 = vsel %vm731_vm4, %v1398_v12, 0.0  ;;  %v977_v60 = vpop.permute.xlu1 %976 }
 0x3a9   : > { %v790_v10 = vadd.f32 %v789_v8, %v788_v7  ;;  %v797_v19 = vsel %vm731_vm4, %v1400_v15, 0.0 }
 0x3ab   : > { %v792_v13 = vadd.f32 %v791_v11, %v790_v10 }
 0x3ac   : > { %v979_v4 = vpop.permute.xlu1 %978 }
 0x3ad   : > { %v794_v16 = vadd.f32 %v793_v14, %v792_v13 }
 0x3af   : > { %v796_v18 = vadd.f32 %v795_v17, %v794_v16 }
 0x3b0   : > { %v981_v14 = vpop.permute.xlu1 %980 }
 0x3b1   : > { %v798_v20 = vadd.f32 %v797_v19, %v796_v18 }
 0x3b3   : > { %v799_v21 = vrot.slane %v798_v20, 4 }
 0x3b5   : > { %v800_v22 = vadd.f32 %v799_v21, %v798_v20  ;;  %v983_v21 = vpop.permute.xlu1 %982 }
 0x3b7   : > { %v801_v23 = vrot.slane %v800_v22, 2 }
 0x3b9   : > { %v802_v25 = vadd.f32 %v801_v23, %v800_v22 }
 0x3bb   : > { %v803_v26 = vrot.slane %v802_v25, 1 }
 0x3bd   : > { %v804_v27 = vadd.f32 %v803_v26, %v802_v25 }
 0x3bf   : > { %1401 = vrcp.f32 %v804_v27 }
 0x3c9   : > { %v1402_v28 = vpop.eup %1401 }
 0x3ca   : > { %v806_v29 = vmul.f32 %v1402_v28, %v1384_v58  ;;  %v807_v24 = vmul.f32 %v1402_v28, %v1386_v59  ;;  %v808_v30 = vmul.f32 %v1402_v28, %v1388_v61  ;;  %v809_v31 = vmul.f32 %v1402_v28, %v1390_v63 }
 0x3cb   : > { %v810_v32 = vmul.f32 %v1402_v28, %v1392_v2  ;;  %v811_v33 = vmul.f32 %v1402_v28, %v1394_v6  ;;  %v812_v34 = vmul.f32 %v1402_v28, %v1396_v9  ;;  %v813_v35 = vmul.f32 %v1402_v28, %v1398_v12 }
 0x3cc   : > { %1290 = vmatmul.mubr.msk.f32.vlgmr.msra.gmra.mrb[12].mxu1 %vm731_vm4, %v806_v29  ;;  %v814_v36 = vmul.f32 %v1402_v28, %v1400_v15 }
 0x3cd   : > { %1292 = vmatprep.mubr.msk.f32.mxu1 %vm1468_vm0, %v1467_v3 }
 0x3d0   : > { %1293 = vmatmul.mubr.msk.f32.gmra.mrb[14].mxu1 %vm731_vm4, %v807_v24 }
 0x3d1   : > { %1295 = vmatprep.mubr.msk.f32.mxu1 %vm1468_vm0, %v1467_v3 }
 0x3d4   : > { %1296 = vmatmul.mubr.msk.f32.gmra.mrb[16].mxu1 %vm731_vm4, %v808_v30 }
 0x3d5   : > { %1298 = vmatprep.mubr.msk.f32.mxu1 %vm1468_vm0, %v1467_v3 }
 0x3d8   : > { %1299 = vmatmul.mubr.msk.f32.gmra.mrb[18].mxu1 %vm731_vm4, %v809_v31 }
 0x3d9   : > { %1301 = vmatprep.mubr.msk.f32.mxu1 %vm1468_vm0, %v1467_v3 }
 0x3dc   : > { %1302 = vmatmul.mubr.msk.f32.gmra.mrb[20].mxu1 %vm731_vm4, %v810_v32 }
 0x3dd   : > { %1304 = vmatprep.mubr.msk.f32.mxu1 %vm1468_vm0, %v1467_v3 }
 0x3e0   : > { %1305 = vmatmul.mubr.msk.f32.gmra.mrb[22].mxu1 %vm731_vm4, %v811_v33 }
 0x3e1   : > { %1307 = vmatprep.mubr.msk.f32.mxu1 %vm1468_vm0, %v1467_v3 }
 0x3e4   : > { %1308 = vmatmul.mubr.msk.f32.gmra.mrb[24].mxu1 %vm731_vm4, %v812_v34 }
 0x3e5   : > { %1310 = vmatprep.mubr.msk.f32.mxu1 %vm1468_vm0, %v1467_v3 }
 0x3e8   : > { %1311 = vmatmul.mubr.msk.f32.gmra.mrb[26].mxu1 %vm731_vm4, %v813_v35  ;;  %v1030_v35 = vld [vmem:[%s1828_s8] sm:$0x1] }
 0x3e9   : > { %1313 = vmatprep.mubr.msk.f32.mxu1 %vm1468_vm0, %v1467_v3 }
 0x3ec   : > { %1314 = vmatmul.mubr.msk.f32.gmra.mrb[28].mxu1 %vm731_vm4, %v814_v36 }
 0x49f   : > { %v913_v42 = vpop.f32.mrb[12].mxu1 }
 0x4a0   : > { %v1291_v43 = vpop.f32.mrb[13].mxu1  ;;  %v993_v45 = vmul.f32 %v967_v39, %v913_v42 }
 0x4a2   : > { %v1002_v49 = vsel %vm383_vm1, %v993_v45, 0.0 }
 0x4a3   : > { %v918_v46 = vpop.f32.mrb[14].mxu1 }
 0x4a4   : > { %v994_v47 = vmul.f32 %v969_v40, %v918_v46  ;;  %v1294_v48 = vpop.f32.mrb[15].mxu1 }
 0x4a6   : > { %v1003_v50 = vsel %vm383_vm1, %v994_v47, 0.0 }
 0x4a7   : > { %v1004_v52 = vadd.f32 %v1003_v50, %v1002_v49  ;;  %v923_v53 = vpop.f32.mrb[16].mxu1 }
 0x4a8   : > { %v995_v54 = vmul.f32 %v971_v41, %v923_v53  ;;  %v1297_v3 = vpop.f32.mrb[17].mxu1 }
 0x4aa   : > { %v1005_v55 = vsel %vm383_vm1, %v995_v54, 0.0 }
 0x4ab   : > { %v1006_v56 = vadd.f32 %v1005_v55, %v1004_v52  ;;  %v928_v57 = vpop.f32.mrb[18].mxu1 }
 0x4ac   : > { %v996_v58 = vmul.f32 %v973_v44, %v928_v57  ;;  %v1300_v59 = vpop.f32.mrb[19].mxu1 }
 0x4ae   : > { %v1007_v61 = vsel %vm383_vm1, %v996_v58, 0.0 }
 0x4af   : > { %v1008_v62 = vadd.f32 %v1007_v61, %v1006_v56  ;;  %v933_v63 = vpop.f32.mrb[20].mxu1 }
 0x4b0   : > { %v997_v0 = vmul.f32 %v975_v51, %v933_v63  ;;  %v1303_v1 = vpop.f32.mrb[21].mxu1 }
 0x4b2   : > { %v1009_v2 = vsel %vm383_vm1, %v997_v0, 0.0 }
 0x4b3   : > { %v1010_v5 = vadd.f32 %v1009_v2, %v1008_v62  ;;  %v938_v6 = vpop.f32.mrb[22].mxu1 }
 0x4b4   : > { %v998_v7 = vmul.f32 %v977_v60, %v938_v6  ;;  %v1306_v8 = vpop.f32.mrb[23].mxu1 }
 0x4b6   : > { %v1011_v9 = vsel %vm383_vm1, %v998_v7, 0.0 }
 0x4b7   : > { %v1012_v10 = vadd.f32 %v1011_v9, %v1010_v5  ;;  %v943_v11 = vpop.f32.mrb[24].mxu1 }
 0x4b8   : > { %v999_v12 = vmul.f32 %v979_v4, %v943_v11  ;;  %v1309_v13 = vpop.f32.mrb[25].mxu1 }
 0x4ba   : > { %v1013_v15 = vsel %vm383_vm1, %v999_v12, 0.0 }
 0x4bb   : > { %v1014_v16 = vadd.f32 %v1013_v15, %v1012_v10  ;;  %v948_v17 = vpop.f32.mrb[26].mxu1 }
 0x4bc   : > { %v1000_v18 = vmul.f32 %v981_v14, %v948_v17  ;;  %v1312_v19 = vpop.f32.mrb[27].mxu1 }
 0x4be   : > { %v1015_v20 = vsel %vm383_vm1, %v1000_v18, 0.0 }
 0x4bf   : > { %v1016_v22 = vadd.f32 %v1015_v20, %v1014_v16  ;;  %v953_v23 = vpop.f32.mrb[28].mxu1 }
 0x4c0   : > { %v1001_v25 = vmul.f32 %v983_v21, %v953_v23  ;;  %v1315_v26 = vpop.f32.mrb[29].mxu1 }
 0x4c2   : > { %v1017_v27 = vsel %vm383_vm1, %v1001_v25, 0.0 }
 0x4c3   : > { %v1018_v28 = vadd.f32 %v1017_v27, %v1016_v22 }
 0x4c5   : > { %v1019_v29 = vrot.slane %v1018_v28, 4 }
 0x4c7   : > { %v1020_v24 = vadd.f32 %v1019_v29, %v1018_v28 }
 0x4c9   : > { %v1021_v30 = vrot.slane %v1020_v24, 2 }
 0x4cb   : > { %v1022_v31 = vadd.f32 %v1021_v30, %v1020_v24 }
 0x4cd   : > { %v1023_v32 = vrot.slane %v1022_v31, 1 }
 0x4cf   : > { %v1024_v33 = vadd.f32 %v1023_v32, %v1022_v31 }
 0x4d1   : > { %v1025_v34 = vpack.c.bf16 %v1024_v33, %v1024_v33 }
 0x4d3   : > { %1321 = vmatmul.mubr.msk.bf16.vlgmr.msra.gmra.mrb[28].mxu0 %vm383_vm1, %v1025_v34 }
 0x5a6   : > { %v1080_v36 = vpop.f32.mrb[28].mxu0 }
 0x5a7   : > { %v1081_v37 = vadd.f32 %v1080_v36, %v1030_v35  ;;  %v1322_v38 = vpop.f32.mrb[29].mxu0 }
 0x5a8   : > { %v1083_v39 = vpop.f32.mrb[30].mxu0 }
 0x5a9   : > { %1086 = vst [vmem:[%s324_s23] sm:$0x1] %v1081_v37  ;;  %v1323_v40 = vpop.f32.mrb[31].mxu0 }
 0x5aa   : > { %1416 = shalt.err (!%p1413_p3)
}
 0x5ab   : > { %s1417_s16 = scalar_lea.hbm %s1778_s27, 16  ;;  %s1421_s23 = scalar_lea.hbm %s1829_s9, 32 }
 0x5ac   : > { %p1418_p4 = scmp.ne.s32.totalorder %s1778_s27, %s1417_s16  ;;  %p1422_p9 = scmp.lt.u32.totalorder %s1778_s27, %s1829_s9 }
 0x5ad   : > { %p1423_p10 = scmp.lt.u32.totalorder %s1421_s23, %s1417_s16  ;;  %p1425_p12 = scmp.lt.u32.totalorder %s1417_s16, %s1778_s27 }
 0x5ae   : > { %p1419_p7 = pnand %p1418_p4, %p1562_p5 }
 0x5af   : > { %p1424_p11 = por %p1423_p10, %p1422_p9 }
 0x5b0   : > { %p1420_p8 = pneg %p1419_p7 }
 0x5b1   : > { %p1426_p13 = por %p1425_p12, %p1424_p11 }
 0x5b3   : > { %p1427_p0 = pnand %p1426_p13, %p1420_p8 }
 0x5b5   : > { %1430 = shalt.err (!%p1427_p0)
}
 0x5b6   : > { %1334 = dma.vmem_to_hbm [thread:$0]  (%p1562_p5), %s1780_s24, 16, %s1778_s27, %s1088_s28  }
 0x5b7 PF: > { %p1340_p1 = scmp.ge.s32.totalorder %s1465_s12, 2  ;;  %s1112_s13 = sand.u32 1, %s1453_s30  }
 0x5b8   : > { %s1113_s29 = scalar_lea.sflag [#allocation3], %s1112_s13 }
 0x5b9   : > { %p1337_p2 = pnand %p1340_p1, %p1566_p6 }
 0x5bb   : > { %1448 = dma.done.wait (!%p1337_p2), %s1113_s29, 16  }
 0x5bc   : > { %1450 = vsyncadd (!%p1337_p2), %s1113_s29, 4294967280  ;;  %p19_p3 = scmp.ge.s32.totalorder %s1549_s15, 4   ;;  %s1832_s30 = smov %s1457_s10 }
 0x5bd   : > { %s1833_s10 = smov %s1461_s11  ;;  %s1834_s11 = smov %s1560_s18 }
 0x5be   : > { %s1835_s12 = smov %s1549_s15  ;;  %21 = sbr.rel (!%p19_p3) target bundleno = 3 (0x3), region = 91 }
 0x5c5   :  { %1117 = vsyncpa [#allocation3], 1 }
 0x5c6   :  { %1119 = vsyncpa [#allocation3 + $0x1], 1 }

</bundles_post_ra>
